<compile_context>
chip_gen: v7x
topology: tpu7x:2x2x1
jax: 0.10.0
libtpu: 0.0.40
codegen_flags: <defaults>
</compile_context>

<pallas_src>
import functools

import jax
import jax.numpy as jnp
from jax.experimental import pallas as pl
from jax.experimental.pallas import tpu as pltpu


def _round_up(x, m):
    return ((x + m - 1) // m) * m


def _vmem_plan():
    """Per-generation byte budgets: (target logits-tile bytes, vmem_limit_bytes)."""
    vmem = None
    try:
        info = pltpu.get_tpu_info()
        vmem = getattr(info, "vmem_capacity_bytes", None)
    except Exception:
        vmem = None
    if vmem is None or vmem <= 0:
        vmem = 64 * 1024 * 1024                      # assume smallest (v7x per-TC)
    if vmem >= 100 * 1024 * 1024:                    # v5e / v6e: 128 MiB physical
        return 4 * 1024 * 1024, 64 * 1024 * 1024
    return 3 * 1024 * 1024, 48 * 1024 * 1024         # v7x: 64 MiB per TensorCore


def _focal_loss_kernel(*refs, gamma, n_rows, has_alpha, partial_out):
    if has_alpha:
        logits_ref, targets_ref, alpha_ref, out_ref = refs
    else:
        logits_ref, targets_ref, out_ref = refs
        alpha_ref = None

    x = logits_ref[...].astype(jnp.float32)          # (TN, C) native dtype -> f32
    t = targets_ref[...]                             # (TN, 1) int32
    tn, c = x.shape

    # Rows past the real batch (ragged last tile reads unspecified data) are
    # masked out with a row-index mask; no batch padding is done in HBM.
    row = pl.program_id(0) * tn + jax.lax.broadcasted_iota(jnp.int32, (tn, 1), 0)
    valid = row < n_rows

    # One-hot of the target class, built once, reused for both lane gathers.
    col = jax.lax.broadcasted_iota(jnp.int32, (tn, c), 1)
    mask = col == t                                  # (TN, C)

    # Numerically-stable softmax pieces over the class (lane) axis.
    m = jnp.max(x, axis=-1, keepdims=True)                           # (TN, 1)
    sumexp = jnp.sum(jnp.exp(x - m), axis=-1, keepdims=True)         # (TN, 1)
    tgt = jnp.sum(jnp.where(mask, x, 0.0), axis=-1, keepdims=True)   # (TN, 1)

    ce = (m - tgt) + jnp.log(sumexp)                 # cross-entropy per row
    # pt from the same intermediates (shorter dep chain than exp(-ce)); exact
    # reciprocal keeps parity with the reference (flip approx=True only if
    # ~1e-4 relative error on the modulation factor is acceptable).
    pt = jnp.exp(tgt - m) * pl.reciprocal(sumexp, approx=False)
    omp = jnp.clip(1.0 - pt, 0.0, 1.0)               # clamp: NaN/negative-safe

    g = float(gamma)
    if g == 2.0:
        mod = omp * omp                              # VPU square, no EUP power
    elif g.is_integer() and 0.0 <= g <= 8.0:
        mod = jnp.ones_like(omp)
        for _ in range(int(g)):
            mod = mod * omp
    else:
        mod = jnp.power(omp, jnp.float32(g))
    focal = mod * ce

    if has_alpha:
        # alpha[targets] via the same one-hot mask.  (If profiling ever shows
        # XLU saturation, this lane-reduce can move to the idle MXU as
        # jnp.dot(mask.astype(f32), alpha_col).)
        a = alpha_ref[...].astype(jnp.float32)       # (1, C)
        at = jnp.sum(jnp.where(mask, a, 0.0), axis=-1, keepdims=True)
        focal = at * focal

    focal = jnp.where(valid, focal, 0.0)             # (TN, 1)

    if partial_out:
        # One scalar per grid step, broadcast into a lane-dense (8,128) tile
        # (unmasked vst); the wrapper reads element [.,0,0] of each tile.
        s = jnp.sum(focal)
        out_ref[...] = jnp.broadcast_to(s, out_ref.shape)
    else:
        out_ref[...] = focal.astype(out_ref.dtype)


def focal_loss(logits, targets, alpha=None, gamma=2.0, reduction="mean"):
    """logits: (N, C) float (any dtype), targets: (N,) int, alpha: (C,) or None."""
    n, c = logits.shape
    dtype_bytes = jnp.dtype(logits.dtype).itemsize

    tile_target_bytes, vmem_limit = _vmem_plan()
    row_bytes = max(c * dtype_bytes, 1)
    tile_n = max(8, (tile_target_bytes // row_bytes) // 8 * 8)
    tile_n = min(tile_n, _round_up(n, 8))
    # Keep >=4 grid steps when the batch allows it: gives the "parallel" axis
    # something to shard across v7x's two TensorCores and depth to pipeline.
    while tile_n > 8 and pl.cdiv(n, tile_n) < 4:
        tile_n = max(8, ((tile_n // 2) + 7) // 8 * 8)

    num_tiles = pl.cdiv(n, tile_n)
    grid = (num_tiles,)

    t2 = targets.reshape(n, 1).astype(jnp.int32)     # tiny; the big array is untouched
    has_alpha = alpha is not None

    in_specs = [
        pl.BlockSpec((tile_n, c), lambda i: (i, 0)),     # logits, native dtype, no pad
        pl.BlockSpec((tile_n, 1), lambda i: (i, 0)),     # targets
    ]
    inputs = [logits, t2]
    if has_alpha:
        a2 = alpha.astype(jnp.float32).reshape(1, c)
        in_specs.append(pl.BlockSpec((1, c), lambda i: (0, 0)))  # stays resident
        inputs.append(a2)

    partial_out = reduction in ("mean", "sum")
    if partial_out:
        out_shape = jax.ShapeDtypeStruct((num_tiles, 8, 128), jnp.float32)
        out_spec = pl.BlockSpec((1, 8, 128), lambda i: (i, 0, 0))
        out_bytes = num_tiles * 8 * 128 * 4
    else:
        out_shape = jax.ShapeDtypeStruct((n, 1), jnp.float32)
        out_spec = pl.BlockSpec((tile_n, 1), lambda i: (i, 0))
        out_bytes = n * 4

    kernel = functools.partial(
        _focal_loss_kernel, gamma=gamma, n_rows=n,
        has_alpha=has_alpha, partial_out=partial_out)

    out = pl.pallas_call(
        kernel,
        out_shape=out_shape,
        grid=grid,
        in_specs=in_specs,
        out_specs=out_spec,
        compiler_params=pltpu.CompilerParams(
            dimension_semantics=("parallel",),
            vmem_limit_bytes=vmem_limit,
        ),
        cost_estimate=pl.CostEstimate(
            flops=8 * n * c,
            transcendentals=n * c + 4 * n,
            bytes_accessed=n * c * dtype_bytes + n * 4
            + (c * 4 if has_alpha else 0) + out_bytes,
        ),
    )(*inputs)

    if reduction == "mean":
        return jnp.sum(out[:, 0, 0]) / jnp.float32(n)
    elif reduction == "sum":
        return jnp.sum(out[:, 0, 0])
    else:  # 'none'
        return out[:, 0]


def focal_loss_ref(logits, targets, alpha, gamma=2.0):
    """Plain-JAX reference (mirrors the PyTorch module, reduction='mean')."""
    logp = jax.nn.log_softmax(logits.astype(jnp.float32), axis=-1)
    ce = -jnp.take_along_axis(logp, targets[:, None].astype(jnp.int32), axis=-1)[:, 0]
    pt = jnp.exp(-ce)
    fl = (1.0 - pt) ** gamma * ce
    if alpha is not None:
        fl = alpha[targets] * fl
    return jnp.mean(fl)


if __name__ == "__main__":
    key = jax.random.PRNGKey(0)
    k1, k2 = jax.random.split(key)

    N, C = 8, 16   # small synthetic shapes: batch of 8 samples, 16 classes
    logits = jax.random.normal(k1, (N, C), dtype=jnp.float32)
    targets = jax.random.randint(k2, (N,), 0, C, dtype=jnp.int32)
    alpha = jnp.linspace(0.5, 1.5, C, dtype=jnp.float32)
    gamma = 2.0

    # Main path: alpha weights + reduction='mean'
    out = jax.block_until_ready(focal_loss(logits, targets, alpha, gamma=gamma))
    ref = focal_loss_ref(logits, targets, alpha, gamma=gamma)
    assert jnp.allclose(out, ref, rtol=1e-5, atol=1e-5), (out, ref)

    # alpha=None path (compile-time branch that skips the alpha gather)
    out2 = jax.block_until_ready(focal_loss(logits, targets, None, gamma=gamma))
    ref2 = focal_loss_ref(logits, targets, None, gamma=gamma)
    assert jnp.allclose(out2, ref2, rtol=1e-5, atol=1e-5), (out2, ref2)

    print("KERNEL_OK")
</pallas_src>

<mosaic_0001>
module attributes {stable_mosaic.version = 11 : i64} {
  func.func @_focal_loss_kernel(%arg0: i32, %arg1: memref<8x16xf32, #tpu.memory_space<vmem>>, %arg2: memref<8x1xi32, #tpu.memory_space<vmem>>, %arg3: memref<1x16xf32, #tpu.memory_space<vmem>>, %arg4: memref<1x8x128xf32, #tpu.memory_space<vmem>>) attributes {dimension_semantics = [#tpu.dimension_semantics<parallel>], iteration_bounds = array<i64: 1>, scalar_prefetch = 0 : i64, scratch_operands = 0 : i64, tpu.core_type = #tpu.core_type<tc>, window_params = [{transform_indices = @transform_0, window_bounds = array<i64: 8, 16>}, {transform_indices = @transform_1, window_bounds = array<i64: 8, 1>}, {pipeline_mode = #tpu.pipeline_mode<synchronous>, transform_indices = @transform_2, window_bounds = array<i64: 1, 16>}, {transform_indices = @transform_3, window_bounds = array<i64: 1, 8, 128>}]} {
    %c0 = arith.constant 0 : index
    %c0_0 = arith.constant 0 : index
    %0 = vector.load %arg1[%c0, %c0_0] : memref<8x16xf32, #tpu.memory_space<vmem>>, vector<8x16xf32>
    %c0_1 = arith.constant 0 : index
    %c0_2 = arith.constant 0 : index
    %1 = vector.load %arg2[%c0_1, %c0_2] : memref<8x1xi32, #tpu.memory_space<vmem>>, vector<8x1xi32>
    %c8_i32 = arith.constant 8 : i32
    %2 = arith.muli %arg0, %c8_i32 : i32
    %3 = tpu.iota {dimensions = array<i32: 0>} : vector<8x1xi32>
    %4 = vector.broadcast %2 : i32 to vector<8x1xi32>
    %5 = arith.addi %4, %3 : vector<8x1xi32>
    %c8_i32_3 = arith.constant 8 : i32
    %6 = vector.broadcast %c8_i32_3 : i32 to vector<8x1xi32>
    %7 = arith.cmpi slt, %5, %6 : vector<8x1xi32>
    %8 = tpu.iota {dimensions = array<i32: 1>} : vector<8x16xi32>
    %9 = vector.broadcast %1 : vector<8x1xi32> to vector<8x16xi32>
    %10 = arith.cmpi eq, %8, %9 : vector<8x16xi32>
    %cst = arith.constant dense<0xFF800000> : vector<8xf32>
    %11 = vector.multi_reduction <maximumf>, %0, %cst [1] : vector<8x16xf32> to vector<8xf32>
    %12 = vector.shape_cast %11 : vector<8xf32> to vector<8x1xf32>
    %13 = vector.broadcast %12 : vector<8x1xf32> to vector<8x16xf32>
    %14 = arith.subf %0, %13 : vector<8x16xf32>
    %15 = math.exp %14 : vector<8x16xf32>
    %cst_4 = arith.constant dense<0.000000e+00> : vector<8xf32>
    %16 = vector.multi_reduction <add>, %15, %cst_4 [1] : vector<8x16xf32> to vector<8xf32>
    %17 = vector.shape_cast %16 : vector<8xf32> to vector<8x1xf32>
    %cst_5 = arith.constant 0.000000e+00 : f32
    %18 = vector.broadcast %cst_5 : f32 to vector<8x16xf32>
    %19 = arith.select %10, %0, %18 : vector<8x16xi1>, vector<8x16xf32>
    %cst_6 = arith.constant dense<0.000000e+00> : vector<8xf32>
    %20 = vector.multi_reduction <add>, %19, %cst_6 [1] : vector<8x16xf32> to vector<8xf32>
    %21 = vector.shape_cast %20 : vector<8xf32> to vector<8x1xf32>
    %22 = arith.subf %12, %21 : vector<8x1xf32>
    %23 = math.log %17 : vector<8x1xf32>
    %24 = arith.addf %22, %23 : vector<8x1xf32>
    %25 = arith.subf %21, %12 : vector<8x1xf32>
    %26 = math.exp %25 : vector<8x1xf32>
    %27 = tpu.reciprocal %17 : vector<8x1xf32> -> vector<8x1xf32>
    %28 = arith.mulf %26, %27 : vector<8x1xf32>
    %cst_7 = arith.constant 1.000000e+00 : f32
    %29 = vector.broadcast %cst_7 : f32 to vector<8x1xf32>
    %30 = arith.subf %29, %28 : vector<8x1xf32>
    %cst_8 = arith.constant 0.000000e+00 : f32
    %cst_9 = arith.constant 1.000000e+00 : f32
    %31 = vector.broadcast %cst_8 : f32 to vector<8x1xf32>
    %32 = arith.maximumf %31, %30 : vector<8x1xf32>
    %33 = vector.broadcast %cst_9 : f32 to vector<8x1xf32>
    %34 = arith.minimumf %33, %32 : vector<8x1xf32>
    %35 = arith.mulf %34, %34 : vector<8x1xf32>
    %36 = arith.mulf %35, %24 : vector<8x1xf32>
    %c0_10 = arith.constant 0 : index
    %c0_11 = arith.constant 0 : index
    %37 = vector.load %arg3[%c0_10, %c0_11] : memref<1x16xf32, #tpu.memory_space<vmem>>, vector<1x16xf32>
    %cst_12 = arith.constant 0.000000e+00 : f32
    %38 = vector.shape_cast %37 : vector<1x16xf32> to vector<1x16xf32>
    %39 = vector.broadcast %38 : vector<1x16xf32> to vector<8x16xf32>
    %40 = vector.broadcast %cst_12 : f32 to vector<8x16xf32>
    %41 = arith.select %10, %39, %40 : vector<8x16xi1>, vector<8x16xf32>
    %cst_13 = arith.constant dense<0.000000e+00> : vector<8xf32>
    %42 = vector.multi_reduction <add>, %41, %cst_13 [1] : vector<8x16xf32> to vector<8xf32>
    %43 = vector.shape_cast %42 : vector<8xf32> to vector<8x1xf32>
    %44 = arith.mulf %43, %36 : vector<8x1xf32>
    %cst_14 = arith.constant 0.000000e+00 : f32
    %45 = vector.broadcast %cst_14 : f32 to vector<8x1xf32>
    %46 = arith.select %7, %44, %45 : vector<8x1xi1>, vector<8x1xf32>
    %47 = vector.shape_cast %46 : vector<8x1xf32> to vector<1x8x1xf32>
    %cst_15 = arith.constant dense<0.000000e+00> : vector<1xf32>
    %48 = vector.multi_reduction <add>, %47, %cst_15 [1, 2] : vector<1x8x1xf32> to vector<1xf32>
    %49 = vector.shape_cast %48 : vector<1xf32> to vector<1x1x1xf32>
    %50 = vector.extract %49[0, 0, 0] : f32 from vector<1x1x1xf32>
    %51 = vector.broadcast %50 : f32 to vector<1x8x128xf32>
    %c0_16 = arith.constant 0 : index
    %c0_17 = arith.constant 0 : index
    %c0_18 = arith.constant 0 : index
    %52 = vector.load %arg4[%c0_16, %c0_17, %c0_18] : memref<1x8x128xf32, #tpu.memory_space<vmem>>, vector<1x8x128xf32>
    tpu.vector_store %arg4[%c0_16, %c0_17, %c0_18], %51 {strides = array<i32>} : memref<1x8x128xf32, #tpu.memory_space<vmem>>, vector<1x8x128xf32>,
    return
  }
  func.func @transform_0(%arg0: i32) -> (i32, i32) {
    %c0_i32 = arith.constant 0 : i32
    %c0_i32_0 = arith.constant 0 : i32
    return %arg0, %c0_i32 : i32, i32
  }
  func.func @transform_1(%arg0: i32) -> (i32, i32) {
    %c0_i32 = arith.constant 0 : i32
    %c0_i32_0 = arith.constant 0 : i32
    return %arg0, %c0_i32 : i32, i32
  }
  func.func @transform_2(%arg0: i32) -> (i32, i32) {
    %c0_i32 = arith.constant 0 : i32
    %c0_i32_0 = arith.constant 0 : i32
    %c0_i32_1 = arith.constant 0 : i32
    return %c0_i32, %c0_i32_0 : i32, i32
  }
  func.func @transform_3(%arg0: i32) -> (i32, i32, i32) {
    %c0_i32 = arith.constant 0 : i32
    %c0_i32_0 = arith.constant 0 : i32
    %c0_i32_1 = arith.constant 0 : i32
    return %arg0, %c0_i32, %c0_i32_0 : i32, i32, i32
  }
}

</mosaic_0001>

<bundles_post_ra>
// kernel: tpu_custom_call.1
= control target key start
LH: loop header
LB: loop body
LE: loop exit
PB: predicated region body
PF: predicated region fallthrough
CT: control target
= control target key end

     0   :  { %vm29_vm0 = vcmask 130048   ;;  %s182_s0 = inlined_call_operand.vmem [shape: f32[8,16], index: 0, kind: input, shape index: {}]   ;;  %s183_s1 = inlined_call_operand.vmem [shape: s32[8,1], index: 1, kind: input, shape index: {}]   ;;  %s184_s2 = inlined_call_operand.vmem [shape: f32[1,16], index: 2, kind: input, shape index: {}]   ;;  %s185_s3 = inlined_call_operand.hbm [shape: f32[1,8,128], index: 3, kind: output, shape index: {}]  }
   0x1   :  { %v15_v0 = vld [vmem:[%s182_s0] sm:$0xff] }
   0x2   :  { %8 = vsyncpa [#allocation3], 0  ;;  %v30_v1 = vsel %vm29_vm0, %v15_v0, -inf  ;;  %v135_v2 = vmov 0   ;;  %v16_v3 = vld [vmem:[%s183_s1] sm:$0xff]  ;;  %v23_v6 = vlaneseq  ;;  %vm70_vm2 = vcmask 7168  }
   0x3   :  { %102 = vset.pattern.permute.xlu0 %v135_v2  ;;  %v97_v12 = vld [vmem:[%s184_s2] ss:$0 sm:$0xff]  ;;  %s136_s1 = smov [#allocation2]  }
   0x4   :  { %31 = vmax.xlane.f32.xlu0 %v30_v1  ;;  %v24_v8 = vand.u32 127, %v23_v6  ;;  %s89_s2 = sshll.u32 %s136_s1, 4  ;;  %s90_s2 = int_to_ptr.vmem [resolvable:$true] %s89_s2 }
   0x5   :  { %s111_s18 = scalar_lea.vmem %s90_s2, 128  ;;  %p116_p1 = scmp.lt.s32.totalorder %s90_s2, %s90_s2 }
   0x6   :  { %p112_p0 = scmp.ne.s32.totalorder %s90_s2, %s111_s18  ;;  %p117_p2 = scmp.lt.s32.totalorder %s111_s18, %s111_s18 }
   0x8   :  { %p118_p3 = por %p117_p2, %p116_p1 }
   0xa   :  { %p119_p4 = pnand %p118_p3, %p112_p0 }
  0x1a   :  { %26 = vperm.xlu0 %102, %v16_v3  }
  0x91   :  { %v32_v4 = vpop.xlane.xlu0 %31 }
  0x92   :  { %v33_v5 = vsub.f32 %v15_v0, %v32_v4 }
  0x94   :  { %v34_v7 = vmul.f32 1.442695, %v33_v5 }
  0x96   :  { %103 = vpow2.f32 %v34_v7 }
  0x99   :  { %v27_v9 = vpop.permute.xlu0 %26 }
  0x9a   :  { %vm28_vm1 = vcmp.eq.s32.totalorder %v24_v8, %v27_v9 }
  0x9b   :  { %v39_v10 = vsel %vm28_vm1, %v15_v0, 0.0  ;;  %v64_v15 = vsel %vm28_vm1, %v97_v12, 0.0 }
  0x9c   :  { %v40_v11 = vsel %vm29_vm0, %v39_v10, 0.0  ;;  %v65_v16 = vsel %vm29_vm0, %v64_v15, 0.0 }
  0x9d   :  { %41 = vadd.xlane.f32.xlu1 %v40_v11 }
  0xa0   :  { %v104_v13 = vpop.eup %103 }
  0xa1   :  { %v36_v14 = vsel %vm29_vm0, %v104_v13, 0.0 }
  0xa2   :  { %37 = vadd.xlane.f32.xlu1 %v36_v14 }
  0xa6   :  { %66 = vadd.xlane.f32.xlu1 %v65_v16 }
 0x12a   :  { %v42_v17 = vpop.xlane.xlu1 %41 }
 0x12b   :  { %v47_v18 = vsub.f32 %v42_v17, %v32_v4  ;;  %v43_v28 = vsub.f32 %v32_v4, %v42_v17 }
 0x12d   :  { %v48_v19 = vmul.f32 1.442695, %v47_v18 }
 0x12f   :  { %105 = vpow2.f32 %v48_v19  ;;  %v38_v20 = vpop.xlane.xlu1 %37 }
 0x130   :  { %107 = vrcp.f32 %v38_v20 }
 0x131   :  { %109 = vlog2.f32 %v38_v20 }
 0x133   :  { %v67_v33 = vpop.xlane.xlu1 %66 }
 0x139   :  { %v106_v21 = vpop.eup %105 }
 0x13a   :  { %v108_v22 = vpop.eup %107 }
 0x13b   :  { %v51_v23 = vmul.f32 %v108_v22, %v106_v21  ;;  %v110_v24 = vpop.eup %109 }
 0x13c   :  { %v45_v26 = vmul.f32 0.6931472, %v110_v24 }
 0x13d   :  { %v52_v25 = vsub.f32 1.0, %v51_v23 }
 0x13e   :  { %v46_v30 = vadd.f32 %v45_v26, %v43_v28 }
 0x13f   :  { %v53_v27 = vmax.f32 %v52_v25, 0.0 }
 0x141   :  { %v54_v29 = vmin.f32 %v53_v27, 1.0 }
 0x143   :  { %v55_v31 = vmul.f32 %v54_v29, %v54_v29 }
 0x145   :  { %v56_v32 = vmul.f32 %v55_v31, %v46_v30 }
 0x147   :  { %v68_v34 = vmul.f32 %v67_v33, %v56_v32 }
 0x149   :  { %v71_v35 = vsel %vm70_vm2, %v68_v34, 0.0 }
 0x14a   :  { %72 = vadd.xlane.f32.xlu1 %v71_v35 }
 0x1d7   :  { %v73_v36 = vpop.xlane.xlu1 %72 }
 0x1d8   :  { %v74_v37 = vrot.slane %v73_v36, 4 }
 0x1da   :  { %v75_v38 = vadd.f32 %v74_v37, %v73_v36 }
 0x1dc   :  { %v76_v39 = vrot.slane %v75_v38, 2 }
 0x1de   :  { %v77_v40 = vadd.f32 %v76_v39, %v75_v38 }
 0x1e0   :  { %v78_v41 = vrot.slane %v77_v40, 1 }
 0x1e2   :  { %v79_v42 = vadd.f32 %v78_v41, %v77_v40 }
 0x1e4   :  { %98 = vpush %v79_v42 }
 0x215   :  { %s99_s17 = spop %98 }
 0x216   :  { %v81_v43 = vstv %s99_s17 }
 0x217   :  { %82 = vst [vmem:[#allocation2] sm:$0xff] %v81_v43 }
 0x218   :  { %122 = shalt.err (!%p119_p4)
}
 0x219   :  { %s123_s21 = scalar_lea.hbm %s185_s3, 128 }
 0x21a   :  { %p124_p5 = scmp.ne.s32.totalorder %s185_s3, %s123_s21  ;;  %p127_p6 = scmp.lt.u32.totalorder %s123_s21, %s185_s3 }
 0x21c   :  { %p129_p7 = pnand %p127_p6, %p124_p5 }
 0x21e   :  { %132 = shalt.err (!%p129_p7)
}
 0x21f   :  { %92 = dma.vmem_to_hbm [thread:$0]  %s90_s2, 128, %s185_s3, [#allocation3]  }
 0x220   :  { %133 = dma.done.wait [#allocation3], 128  }
 0x221   :  { %134 = vsyncadd [#allocation3], 4294967168 }
 0x222   :  { %96 = vsyncpa [#allocation3], 1 }

</bundles_post_ra>
